<compile_context>
chip_gen: v6e
topology: v6e:2x2x1
jax: 0.10.0
libtpu: 0.0.40
codegen_flags: <defaults>
</compile_context>

<pallas_src>
import functools

import jax
import jax.numpy as jnp
from jax.experimental import pallas as pl
from jax.experimental.pallas import tpu as pltpu  # noqa: F401


def _lstm_fc_kernel(x_ref, wih_ref, whh_ref, b_ref, wfc_ref, bfc_ref, out_ref):
    """Full forward pass in one invocation (no grid).

    x_ref   : (T * B, I)   time-major, row = t * B + b   (B = padded batch)
    wih_ref : (I, 4H)      W_ih^T, gate columns reordered [i | f | o | g]
    whh_ref : (H, 4H)      W_hh^T, gate columns reordered [i | f | o | g]
    b_ref   : (1, 4H)      b_ih + b_hh, reordered [i | f | o | g]
    wfc_ref : (H, O_pad)   W_fc^T, zero-padded to 128 output lanes
    bfc_ref : (1, O_pad)   b_fc, zero-padded
    out_ref : (B, O_pad)
    """
    B = out_ref.shape[0]                 # padded batch (multiple of 8)
    T = x_ref.shape[0] // B              # static sequence length
    H = whh_ref.shape[0]

    # ---- Phase 0: hoisted input projection --------------------------------
    # One (T*B, I) @ (I, 4H) MXU matmul for every timestep at once; the bias
    # broadcast is folded in here (not re-done per step).
    xp = jnp.dot(x_ref[...], wih_ref[...],
                 preferred_element_type=jnp.float32) + b_ref[...]

    whh = whh_ref[...]                   # recurrent weights stay resident
    h = jnp.zeros((B, H), jnp.float32)
    c = jnp.zeros((B, H), jnp.float32)

    # ---- Recurrence: fully unrolled static loop (T=8 is small) ------------
    # Per step: one small h @ W_hh^T MXU push + fused gate math.
    # (For large T: lax.fori_loop(..., unroll=True) + xp in VMEM scratch.)
    for t in range(T):
        gates = xp[t * B:(t + 1) * B, :] + jnp.dot(
            h, whh, preferred_element_type=jnp.float32)

        # Gate columns are pre-reordered to [i | f | o | g]:
        #   one fused sigmoid (tanh identity -> single EUP op) over lanes 0:3H
        #   one tanh over lanes 3H:4H
        sig = 0.5 * jnp.tanh(0.5 * gates[:, 0:3 * H]) + 0.5
        g_g = jnp.tanh(gates[:, 3 * H:4 * H])

        i_g = sig[:, 0:H]
        f_g = sig[:, H:2 * H]
        o_g = sig[:, 2 * H:3 * H]

        c = f_g * c + i_g * g_g
        h = o_g * jnp.tanh(c)

    # ---- Final FC on the last hidden state only (lane-dense store) --------
    out_ref[...] = (jnp.dot(h, wfc_ref[...], preferred_element_type=jnp.float32)
                    + bfc_ref[...]).astype(out_ref.dtype)


def prepare_params(params):
    """One-time parameter plumbing (run OUTSIDE the jitted forward).

    Transposes weights, folds the two biases, reorders gate blocks from
    PyTorch's [i, f, g, o] to [i, f, o, g], and zero-pads the FC output dim
    to 128 lanes.
    """
    H = params["w_hh"].shape[1]
    O = params["w_fc"].shape[0]
    O_pad = max(128, ((O + 127) // 128) * 128)

    def reorder_rows(w):                 # w: (4H, X), row blocks [i, f, g, o]
        i, f, g, o = jnp.split(jnp.asarray(w), 4, axis=0)
        return jnp.concatenate([i, f, o, g], axis=0)

    bias = params["b_ih"] + params["b_hh"]                       # (4H,)
    bi, bf, bg, bo = jnp.split(bias, 4)
    bias_r = jnp.concatenate([bi, bf, bo, bg]).reshape(1, 4 * H)

    wfc_t = jnp.asarray(params["w_fc"]).T                        # (H, O)
    wfc_t = jnp.pad(wfc_t, ((0, 0), (0, O_pad - O)))             # (H, O_pad)
    bfc = jnp.pad(params["b_fc"], (0, O_pad - O)).reshape(1, O_pad)

    return {
        "wih_t": reorder_rows(params["w_ih"]).T,                 # (I, 4H)
        "whh_t": reorder_rows(params["w_hh"]).T,                 # (H, 4H)
        "bias": bias_r,                                          # (1, 4H)
        "wfc_t": wfc_t,                                          # (H, O_pad)
        "bfc": bfc,                                              # (1, O_pad)
    }


@functools.partial(jax.jit, static_argnames=("output_size",))
def lstm_model_forward(x, prepped, output_size):
    """x: (B, T, I) float32 (batch_first, like the PyTorch module)."""
    B, T, I = x.shape

    # Pad batch to the f32 sublane width (8); zero rows are harmless and
    # sliced off after the kernel.
    B_pad = max(8, ((B + 7) // 8) * 8)
    if B_pad != B:
        x = jnp.pad(x, ((0, B_pad - B), (0, 0), (0, 0)))

    # Time-major, flattened to 2-D so every timestep is a contiguous,
    # vreg-aligned row block inside the kernel (phase-0 matmul consumes all
    # of x at once).
    x_tm = jnp.swapaxes(x, 0, 1).reshape(T * B_pad, I)

    O_pad = prepped["wfc_t"].shape[1]

    # Single kernel invocation, no grid: every operand is whole-array
    # resident in VMEM (total footprint here is << 1 MiB).
    out = pl.pallas_call(
        _lstm_fc_kernel,
        out_shape=jax.ShapeDtypeStruct((B_pad, O_pad), jnp.float32),
    )(x_tm, prepped["wih_t"], prepped["whh_t"], prepped["bias"],
      prepped["wfc_t"], prepped["bfc"])

    return out[:B, :output_size]


def lstm_model_reference(x, params):
    """Pure-JAX reference matching PyTorch nn.LSTM + nn.Linear semantics."""
    B, T, I = x.shape
    H = params["w_hh"].shape[1]

    def step(carry, x_t):
        h, c = carry
        gates = (x_t @ params["w_ih"].T + params["b_ih"]
                 + h @ params["w_hh"].T + params["b_hh"])
        i_g = jax.nn.sigmoid(gates[:, 0:H])
        f_g = jax.nn.sigmoid(gates[:, H:2 * H])
        g_g = jnp.tanh(gates[:, 2 * H:3 * H])
        o_g = jax.nn.sigmoid(gates[:, 3 * H:4 * H])
        c = f_g * c + i_g * g_g
        h = o_g * jnp.tanh(c)
        return (h, c), h

    h0 = jnp.zeros((B, H), jnp.float32)
    c0 = jnp.zeros((B, H), jnp.float32)
    (h_last, _), _ = jax.lax.scan(step, (h0, c0), jnp.transpose(x, (1, 0, 2)))
    return h_last @ params["w_fc"].T + params["b_fc"]


def init_params(key, input_size, hidden_size, output_size):
    k = jax.random.split(key, 6)
    s = 1.0 / jnp.sqrt(hidden_size)
    return {
        "w_ih": jax.random.uniform(k[0], (4 * hidden_size, input_size),
                                   jnp.float32, -s, s),
        "w_hh": jax.random.uniform(k[1], (4 * hidden_size, hidden_size),
                                   jnp.float32, -s, s),
        "b_ih": jax.random.uniform(k[2], (4 * hidden_size,), jnp.float32, -s, s),
        "b_hh": jax.random.uniform(k[3], (4 * hidden_size,), jnp.float32, -s, s),
        "w_fc": jax.random.uniform(k[4], (output_size, hidden_size),
                                   jnp.float32, -s, s),
        "b_fc": jax.random.uniform(k[5], (output_size,), jnp.float32, -s, s),
    }


if __name__ == "__main__":
    batch, seq, input_size, hidden_size, output_size = 2, 8, 16, 32, 8

    key = jax.random.PRNGKey(0)
    kx, kp = jax.random.split(key)
    x = jax.random.normal(kx, (batch, seq, input_size), jnp.float32)
    params = init_params(kp, input_size, hidden_size, output_size)

    # Parameter plumbing done once, outside the jitted per-call path.
    prepped = prepare_params(params)
    prepped = jax.tree_util.tree_map(jax.block_until_ready, prepped)

    out = lstm_model_forward(x, prepped, output_size)
    out = jax.block_until_ready(out)

    ref = lstm_model_reference(x, params)
    assert out.shape == (batch, output_size)
    assert jnp.allclose(out, ref, atol=1e-5, rtol=1e-5)

    print("KERNEL_OK")
</pallas_src>

<mosaic_0001>
module attributes {stable_mosaic.version = 11 : i64} {
  func.func @_lstm_fc_kernel(%arg0: memref<64x16xf32, #tpu.memory_space<vmem>>, %arg1: memref<16x128xf32, #tpu.memory_space<vmem>>, %arg2: memref<32x128xf32, #tpu.memory_space<vmem>>, %arg3: memref<1x128xf32, #tpu.memory_space<vmem>>, %arg4: memref<32x128xf32, #tpu.memory_space<vmem>>, %arg5: memref<1x128xf32, #tpu.memory_space<vmem>>, %arg6: memref<8x128xf32, #tpu.memory_space<vmem>>) attributes {dimension_semantics = [], scalar_prefetch = 0 : i64, scratch_operands = 0 : i64, tpu.core_type = #tpu.core_type<tc>} {
    %c0 = arith.constant 0 : index
    %c0_0 = arith.constant 0 : index
    %0 = vector.load %arg0[%c0, %c0_0] : memref<64x16xf32, #tpu.memory_space<vmem>>, vector<64x16xf32>
    %c0_1 = arith.constant 0 : index
    %c0_2 = arith.constant 0 : index
    %1 = vector.load %arg1[%c0_1, %c0_2] : memref<16x128xf32, #tpu.memory_space<vmem>>, vector<16x128xf32>
    %cst = arith.constant dense<0.000000e+00> : vector<64x128xf32>
    %2 = tpu.matmul %0, %1, %cst {dimension_numbers = #tpu.dot_dimension_numbers<[1], [0], [0], [1], [0, 0, 1, 1], [], []>} : vector<64x16xf32>, vector<16x128xf32>, vector<64x128xf32> -> vector<64x128xf32>
    %c0_3 = arith.constant 0 : index
    %c0_4 = arith.constant 0 : index
    %3 = vector.load %arg3[%c0_3, %c0_4] : memref<1x128xf32, #tpu.memory_space<vmem>>, vector<1x128xf32>
    %4 = vector.broadcast %3 : vector<1x128xf32> to vector<64x128xf32>
    %5 = arith.addf %2, %4 : vector<64x128xf32>
    %c0_5 = arith.constant 0 : index
    %c0_6 = arith.constant 0 : index
    %6 = vector.load %arg2[%c0_5, %c0_6] : memref<32x128xf32, #tpu.memory_space<vmem>>, vector<32x128xf32>
    %cst_7 = arith.constant 0.000000e+00 : f32
    %7 = vector.broadcast %cst_7 : f32 to vector<8x32xf32>
    %cst_8 = arith.constant 0.000000e+00 : f32
    %8 = vector.broadcast %cst_8 : f32 to vector<8x32xf32>
    %9 = vector.extract_strided_slice %5 {offsets = [0, 0], sizes = [8, 128], strides = [1, 1]} : vector<64x128xf32> to vector<8x128xf32>
    %cst_9 = arith.constant dense<0.000000e+00> : vector<8x128xf32>
    %10 = tpu.matmul %7, %6, %cst_9 {dimension_numbers = #tpu.dot_dimension_numbers<[1], [0], [0], [1], [0, 0, 1, 1], [], []>} : vector<8x32xf32>, vector<32x128xf32>, vector<8x128xf32> -> vector<8x128xf32>
    %11 = arith.addf %9, %10 : vector<8x128xf32>
    %12 = vector.extract_strided_slice %11 {offsets = [0, 0], sizes = [8, 96], strides = [1, 1]} : vector<8x128xf32> to vector<8x96xf32>
    %cst_10 = arith.constant 5.000000e-01 : f32
    %13 = vector.broadcast %cst_10 : f32 to vector<8x96xf32>
    %14 = arith.mulf %13, %12 : vector<8x96xf32>
    %15 = math.tanh %14 : vector<8x96xf32>
    %cst_11 = arith.constant 5.000000e-01 : f32
    %16 = vector.broadcast %cst_11 : f32 to vector<8x96xf32>
    %17 = arith.mulf %16, %15 : vector<8x96xf32>
    %cst_12 = arith.constant 5.000000e-01 : f32
    %18 = vector.broadcast %cst_12 : f32 to vector<8x96xf32>
    %19 = arith.addf %17, %18 : vector<8x96xf32>
    %20 = vector.extract_strided_slice %11 {offsets = [0, 96], sizes = [8, 32], strides = [1, 1]} : vector<8x128xf32> to vector<8x32xf32>
    %21 = math.tanh %20 : vector<8x32xf32>
    %22 = vector.extract_strided_slice %19 {offsets = [0, 0], sizes = [8, 32], strides = [1, 1]} : vector<8x96xf32> to vector<8x32xf32>
    %23 = vector.extract_strided_slice %19 {offsets = [0, 32], sizes = [8, 32], strides = [1, 1]} : vector<8x96xf32> to vector<8x32xf32>
    %24 = vector.extract_strided_slice %19 {offsets = [0, 64], sizes = [8, 32], strides = [1, 1]} : vector<8x96xf32> to vector<8x32xf32>
    %25 = arith.mulf %23, %8 : vector<8x32xf32>
    %26 = arith.mulf %22, %21 : vector<8x32xf32>
    %27 = arith.addf %25, %26 : vector<8x32xf32>
    %28 = math.tanh %27 : vector<8x32xf32>
    %29 = arith.mulf %24, %28 : vector<8x32xf32>
    %30 = vector.extract_strided_slice %5 {offsets = [8, 0], sizes = [8, 128], strides = [1, 1]} : vector<64x128xf32> to vector<8x128xf32>
    %cst_13 = arith.constant dense<0.000000e+00> : vector<8x128xf32>
    %31 = tpu.matmul %29, %6, %cst_13 {dimension_numbers = #tpu.dot_dimension_numbers<[1], [0], [0], [1], [0, 0, 1, 1], [], []>} : vector<8x32xf32>, vector<32x128xf32>, vector<8x128xf32> -> vector<8x128xf32>
    %32 = arith.addf %30, %31 : vector<8x128xf32>
    %33 = vector.extract_strided_slice %32 {offsets = [0, 0], sizes = [8, 96], strides = [1, 1]} : vector<8x128xf32> to vector<8x96xf32>
    %cst_14 = arith.constant 5.000000e-01 : f32
    %34 = vector.broadcast %cst_14 : f32 to vector<8x96xf32>
    %35 = arith.mulf %34, %33 : vector<8x96xf32>
    %36 = math.tanh %35 : vector<8x96xf32>
    %cst_15 = arith.constant 5.000000e-01 : f32
    %37 = vector.broadcast %cst_15 : f32 to vector<8x96xf32>
    %38 = arith.mulf %37, %36 : vector<8x96xf32>
    %cst_16 = arith.constant 5.000000e-01 : f32
    %39 = vector.broadcast %cst_16 : f32 to vector<8x96xf32>
    %40 = arith.addf %38, %39 : vector<8x96xf32>
    %41 = vector.extract_strided_slice %32 {offsets = [0, 96], sizes = [8, 32], strides = [1, 1]} : vector<8x128xf32> to vector<8x32xf32>
    %42 = math.tanh %41 : vector<8x32xf32>
    %43 = vector.extract_strided_slice %40 {offsets = [0, 0], sizes = [8, 32], strides = [1, 1]} : vector<8x96xf32> to vector<8x32xf32>
    %44 = vector.extract_strided_slice %40 {offsets = [0, 32], sizes = [8, 32], strides = [1, 1]} : vector<8x96xf32> to vector<8x32xf32>
    %45 = vector.extract_strided_slice %40 {offsets = [0, 64], sizes = [8, 32], strides = [1, 1]} : vector<8x96xf32> to vector<8x32xf32>
    %46 = arith.mulf %44, %27 : vector<8x32xf32>
    %47 = arith.mulf %43, %42 : vector<8x32xf32>
    %48 = arith.addf %46, %47 : vector<8x32xf32>
    %49 = math.tanh %48 : vector<8x32xf32>
    %50 = arith.mulf %45, %49 : vector<8x32xf32>
    %51 = vector.extract_strided_slice %5 {offsets = [16, 0], sizes = [8, 128], strides = [1, 1]} : vector<64x128xf32> to vector<8x128xf32>
    %cst_17 = arith.constant dense<0.000000e+00> : vector<8x128xf32>
    %52 = tpu.matmul %50, %6, %cst_17 {dimension_numbers = #tpu.dot_dimension_numbers<[1], [0], [0], [1], [0, 0, 1, 1], [], []>} : vector<8x32xf32>, vector<32x128xf32>, vector<8x128xf32> -> vector<8x128xf32>
    %53 = arith.addf %51, %52 : vector<8x128xf32>
    %54 = vector.extract_strided_slice %53 {offsets = [0, 0], sizes = [8, 96], strides = [1, 1]} : vector<8x128xf32> to vector<8x96xf32>
    %cst_18 = arith.constant 5.000000e-01 : f32
    %55 = vector.broadcast %cst_18 : f32 to vector<8x96xf32>
    %56 = arith.mulf %55, %54 : vector<8x96xf32>
    %57 = math.tanh %56 : vector<8x96xf32>
    %cst_19 = arith.constant 5.000000e-01 : f32
    %58 = vector.broadcast %cst_19 : f32 to vector<8x96xf32>
    %59 = arith.mulf %58, %57 : vector<8x96xf32>
    %cst_20 = arith.constant 5.000000e-01 : f32
    %60 = vector.broadcast %cst_20 : f32 to vector<8x96xf32>
    %61 = arith.addf %59, %60 : vector<8x96xf32>
    %62 = vector.extract_strided_slice %53 {offsets = [0, 96], sizes = [8, 32], strides = [1, 1]} : vector<8x128xf32> to vector<8x32xf32>
    %63 = math.tanh %62 : vector<8x32xf32>
    %64 = vector.extract_strided_slice %61 {offsets = [0, 0], sizes = [8, 32], strides = [1, 1]} : vector<8x96xf32> to vector<8x32xf32>
    %65 = vector.extract_strided_slice %61 {offsets = [0, 32], sizes = [8, 32], strides = [1, 1]} : vector<8x96xf32> to vector<8x32xf32>
    %66 = vector.extract_strided_slice %61 {offsets = [0, 64], sizes = [8, 32], strides = [1, 1]} : vector<8x96xf32> to vector<8x32xf32>
    %67 = arith.mulf %65, %48 : vector<8x32xf32>
    %68 = arith.mulf %64, %63 : vector<8x32xf32>
    %69 = arith.addf %67, %68 : vector<8x32xf32>
    %70 = math.tanh %69 : vector<8x32xf32>
    %71 = arith.mulf %66, %70 : vector<8x32xf32>
    %72 = vector.extract_strided_slice %5 {offsets = [24, 0], sizes = [8, 128], strides = [1, 1]} : vector<64x128xf32> to vector<8x128xf32>
    %cst_21 = arith.constant dense<0.000000e+00> : vector<8x128xf32>
    %73 = tpu.matmul %71, %6, %cst_21 {dimension_numbers = #tpu.dot_dimension_numbers<[1], [0], [0], [1], [0, 0, 1, 1], [], []>} : vector<8x32xf32>, vector<32x128xf32>, vector<8x128xf32> -> vector<8x128xf32>
    %74 = arith.addf %72, %73 : vector<8x128xf32>
    %75 = vector.extract_strided_slice %74 {offsets = [0, 0], sizes = [8, 96], strides = [1, 1]} : vector<8x128xf32> to vector<8x96xf32>
    %cst_22 = arith.constant 5.000000e-01 : f32
    %76 = vector.broadcast %cst_22 : f32 to vector<8x96xf32>
    %77 = arith.mulf %76, %75 : vector<8x96xf32>
    %78 = math.tanh %77 : vector<8x96xf32>
    %cst_23 = arith.constant 5.000000e-01 : f32
    %79 = vector.broadcast %cst_23 : f32 to vector<8x96xf32>
    %80 = arith.mulf %79, %78 : vector<8x96xf32>
    %cst_24 = arith.constant 5.000000e-01 : f32
    %81 = vector.broadcast %cst_24 : f32 to vector<8x96xf32>
    %82 = arith.addf %80, %81 : vector<8x96xf32>
    %83 = vector.extract_strided_slice %74 {offsets = [0, 96], sizes = [8, 32], strides = [1, 1]} : vector<8x128xf32> to vector<8x32xf32>
    %84 = math.tanh %83 : vector<8x32xf32>
    %85 = vector.extract_strided_slice %82 {offsets = [0, 0], sizes = [8, 32], strides = [1, 1]} : vector<8x96xf32> to vector<8x32xf32>
    %86 = vector.extract_strided_slice %82 {offsets = [0, 32], sizes = [8, 32], strides = [1, 1]} : vector<8x96xf32> to vector<8x32xf32>
    %87 = vector.extract_strided_slice %82 {offsets = [0, 64], sizes = [8, 32], strides = [1, 1]} : vector<8x96xf32> to vector<8x32xf32>
    %88 = arith.mulf %86, %69 : vector<8x32xf32>
    %89 = arith.mulf %85, %84 : vector<8x32xf32>
    %90 = arith.addf %88, %89 : vector<8x32xf32>
    %91 = math.tanh %90 : vector<8x32xf32>
    %92 = arith.mulf %87, %91 : vector<8x32xf32>
    %93 = vector.extract_strided_slice %5 {offsets = [32, 0], sizes = [8, 128], strides = [1, 1]} : vector<64x128xf32> to vector<8x128xf32>
    %cst_25 = arith.constant dense<0.000000e+00> : vector<8x128xf32>
    %94 = tpu.matmul %92, %6, %cst_25 {dimension_numbers = #tpu.dot_dimension_numbers<[1], [0], [0], [1], [0, 0, 1, 1], [], []>} : vector<8x32xf32>, vector<32x128xf32>, vector<8x128xf32> -> vector<8x128xf32>
    %95 = arith.addf %93, %94 : vector<8x128xf32>
    %96 = vector.extract_strided_slice %95 {offsets = [0, 0], sizes = [8, 96], strides = [1, 1]} : vector<8x128xf32> to vector<8x96xf32>
    %cst_26 = arith.constant 5.000000e-01 : f32
    %97 = vector.broadcast %cst_26 : f32 to vector<8x96xf32>
    %98 = arith.mulf %97, %96 : vector<8x96xf32>
    %99 = math.tanh %98 : vector<8x96xf32>
    %cst_27 = arith.constant 5.000000e-01 : f32
    %100 = vector.broadcast %cst_27 : f32 to vector<8x96xf32>
    %101 = arith.mulf %100, %99 : vector<8x96xf32>
    %cst_28 = arith.constant 5.000000e-01 : f32
    %102 = vector.broadcast %cst_28 : f32 to vector<8x96xf32>
    %103 = arith.addf %101, %102 : vector<8x96xf32>
    %104 = vector.extract_strided_slice %95 {offsets = [0, 96], sizes = [8, 32], strides = [1, 1]} : vector<8x128xf32> to vector<8x32xf32>
    %105 = math.tanh %104 : vector<8x32xf32>
    %106 = vector.extract_strided_slice %103 {offsets = [0, 0], sizes = [8, 32], strides = [1, 1]} : vector<8x96xf32> to vector<8x32xf32>
    %107 = vector.extract_strided_slice %103 {offsets = [0, 32], sizes = [8, 32], strides = [1, 1]} : vector<8x96xf32> to vector<8x32xf32>
    %108 = vector.extract_strided_slice %103 {offsets = [0, 64], sizes = [8, 32], strides = [1, 1]} : vector<8x96xf32> to vector<8x32xf32>
    %109 = arith.mulf %107, %90 : vector<8x32xf32>
    %110 = arith.mulf %106, %105 : vector<8x32xf32>
    %111 = arith.addf %109, %110 : vector<8x32xf32>
    %112 = math.tanh %111 : vector<8x32xf32>
    %113 = arith.mulf %108, %112 : vector<8x32xf32>
    %114 = vector.extract_strided_slice %5 {offsets = [40, 0], sizes = [8, 128], strides = [1, 1]} : vector<64x128xf32> to vector<8x128xf32>
    %cst_29 = arith.constant dense<0.000000e+00> : vector<8x128xf32>
    %115 = tpu.matmul %113, %6, %cst_29 {dimension_numbers = #tpu.dot_dimension_numbers<[1], [0], [0], [1], [0, 0, 1, 1], [], []>} : vector<8x32xf32>, vector<32x128xf32>, vector<8x128xf32> -> vector<8x128xf32>
    %116 = arith.addf %114, %115 : vector<8x128xf32>
    %117 = vector.extract_strided_slice %116 {offsets = [0, 0], sizes = [8, 96], strides = [1, 1]} : vector<8x128xf32> to vector<8x96xf32>
    %cst_30 = arith.constant 5.000000e-01 : f32
    %118 = vector.broadcast %cst_30 : f32 to vector<8x96xf32>
    %119 = arith.mulf %118, %117 : vector<8x96xf32>
    %120 = math.tanh %119 : vector<8x96xf32>
    %cst_31 = arith.constant 5.000000e-01 : f32
    %121 = vector.broadcast %cst_31 : f32 to vector<8x96xf32>
    %122 = arith.mulf %121, %120 : vector<8x96xf32>
    %cst_32 = arith.constant 5.000000e-01 : f32
    %123 = vector.broadcast %cst_32 : f32 to vector<8x96xf32>
    %124 = arith.addf %122, %123 : vector<8x96xf32>
    %125 = vector.extract_strided_slice %116 {offsets = [0, 96], sizes = [8, 32], strides = [1, 1]} : vector<8x128xf32> to vector<8x32xf32>
    %126 = math.tanh %125 : vector<8x32xf32>
    %127 = vector.extract_strided_slice %124 {offsets = [0, 0], sizes = [8, 32], strides = [1, 1]} : vector<8x96xf32> to vector<8x32xf32>
    %128 = vector.extract_strided_slice %124 {offsets = [0, 32], sizes = [8, 32], strides = [1, 1]} : vector<8x96xf32> to vector<8x32xf32>
    %129 = vector.extract_strided_slice %124 {offsets = [0, 64], sizes = [8, 32], strides = [1, 1]} : vector<8x96xf32> to vector<8x32xf32>
    %130 = arith.mulf %128, %111 : vector<8x32xf32>
    %131 = arith.mulf %127, %126 : vector<8x32xf32>
    %132 = arith.addf %130, %131 : vector<8x32xf32>
    %133 = math.tanh %132 : vector<8x32xf32>
    %134 = arith.mulf %129, %133 : vector<8x32xf32>
    %135 = vector.extract_strided_slice %5 {offsets = [48, 0], sizes = [8, 128], strides = [1, 1]} : vector<64x128xf32> to vector<8x128xf32>
    %cst_33 = arith.constant dense<0.000000e+00> : vector<8x128xf32>
    %136 = tpu.matmul %134, %6, %cst_33 {dimension_numbers = #tpu.dot_dimension_numbers<[1], [0], [0], [1], [0, 0, 1, 1], [], []>} : vector<8x32xf32>, vector<32x128xf32>, vector<8x128xf32> -> vector<8x128xf32>
    %137 = arith.addf %135, %136 : vector<8x128xf32>
    %138 = vector.extract_strided_slice %137 {offsets = [0, 0], sizes = [8, 96], strides = [1, 1]} : vector<8x128xf32> to vector<8x96xf32>
    %cst_34 = arith.constant 5.000000e-01 : f32
    %139 = vector.broadcast %cst_34 : f32 to vector<8x96xf32>
    %140 = arith.mulf %139, %138 : vector<8x96xf32>
    %141 = math.tanh %140 : vector<8x96xf32>
    %cst_35 = arith.constant 5.000000e-01 : f32
    %142 = vector.broadcast %cst_35 : f32 to vector<8x96xf32>
    %143 = arith.mulf %142, %141 : vector<8x96xf32>
    %cst_36 = arith.constant 5.000000e-01 : f32
    %144 = vector.broadcast %cst_36 : f32 to vector<8x96xf32>
    %145 = arith.addf %143, %144 : vector<8x96xf32>
    %146 = vector.extract_strided_slice %137 {offsets = [0, 96], sizes = [8, 32], strides = [1, 1]} : vector<8x128xf32> to vector<8x32xf32>
    %147 = math.tanh %146 : vector<8x32xf32>
    %148 = vector.extract_strided_slice %145 {offsets = [0, 0], sizes = [8, 32], strides = [1, 1]} : vector<8x96xf32> to vector<8x32xf32>
    %149 = vector.extract_strided_slice %145 {offsets = [0, 32], sizes = [8, 32], strides = [1, 1]} : vector<8x96xf32> to vector<8x32xf32>
    %150 = vector.extract_strided_slice %145 {offsets = [0, 64], sizes = [8, 32], strides = [1, 1]} : vector<8x96xf32> to vector<8x32xf32>
    %151 = arith.mulf %149, %132 : vector<8x32xf32>
    %152 = arith.mulf %148, %147 : vector<8x32xf32>
    %153 = arith.addf %151, %152 : vector<8x32xf32>
    %154 = math.tanh %153 : vector<8x32xf32>
    %155 = arith.mulf %150, %154 : vector<8x32xf32>
    %156 = vector.extract_strided_slice %5 {offsets = [56, 0], sizes = [8, 128], strides = [1, 1]} : vector<64x128xf32> to vector<8x128xf32>
    %cst_37 = arith.constant dense<0.000000e+00> : vector<8x128xf32>
    %157 = tpu.matmul %155, %6, %cst_37 {dimension_numbers = #tpu.dot_dimension_numbers<[1], [0], [0], [1], [0, 0, 1, 1], [], []>} : vector<8x32xf32>, vector<32x128xf32>, vector<8x128xf32> -> vector<8x128xf32>
    %158 = arith.addf %156, %157 : vector<8x128xf32>
    %159 = vector.extract_strided_slice %158 {offsets = [0, 0], sizes = [8, 96], strides = [1, 1]} : vector<8x128xf32> to vector<8x96xf32>
    %cst_38 = arith.constant 5.000000e-01 : f32
    %160 = vector.broadcast %cst_38 : f32 to vector<8x96xf32>
    %161 = arith.mulf %160, %159 : vector<8x96xf32>
    %162 = math.tanh %161 : vector<8x96xf32>
    %cst_39 = arith.constant 5.000000e-01 : f32
    %163 = vector.broadcast %cst_39 : f32 to vector<8x96xf32>
    %164 = arith.mulf %163, %162 : vector<8x96xf32>
    %cst_40 = arith.constant 5.000000e-01 : f32
    %165 = vector.broadcast %cst_40 : f32 to vector<8x96xf32>
    %166 = arith.addf %164, %165 : vector<8x96xf32>
    %167 = vector.extract_strided_slice %158 {offsets = [0, 96], sizes = [8, 32], strides = [1, 1]} : vector<8x128xf32> to vector<8x32xf32>
    %168 = math.tanh %167 : vector<8x32xf32>
    %169 = vector.extract_strided_slice %166 {offsets = [0, 0], sizes = [8, 32], strides = [1, 1]} : vector<8x96xf32> to vector<8x32xf32>
    %170 = vector.extract_strided_slice %166 {offsets = [0, 32], sizes = [8, 32], strides = [1, 1]} : vector<8x96xf32> to vector<8x32xf32>
    %171 = vector.extract_strided_slice %166 {offsets = [0, 64], sizes = [8, 32], strides = [1, 1]} : vector<8x96xf32> to vector<8x32xf32>
    %172 = arith.mulf %170, %153 : vector<8x32xf32>
    %173 = arith.mulf %169, %168 : vector<8x32xf32>
    %174 = arith.addf %172, %173 : vector<8x32xf32>
    %175 = math.tanh %174 : vector<8x32xf32>
    %176 = arith.mulf %171, %175 : vector<8x32xf32>
    %c0_41 = arith.constant 0 : index
    %c0_42 = arith.constant 0 : index
    %177 = vector.load %arg4[%c0_41, %c0_42] : memref<32x128xf32, #tpu.memory_space<vmem>>, vector<32x128xf32>
    %cst_43 = arith.constant dense<0.000000e+00> : vector<8x128xf32>
    %178 = tpu.matmul %176, %177, %cst_43 {dimension_numbers = #tpu.dot_dimension_numbers<[1], [0], [0], [1], [0, 0, 1, 1], [], []>} : vector<8x32xf32>, vector<32x128xf32>, vector<8x128xf32> -> vector<8x128xf32>
    %c0_44 = arith.constant 0 : index
    %c0_45 = arith.constant 0 : index
    %179 = vector.load %arg5[%c0_44, %c0_45] : memref<1x128xf32, #tpu.memory_space<vmem>>, vector<1x128xf32>
    %180 = vector.broadcast %179 : vector<1x128xf32> to vector<8x128xf32>
    %181 = arith.addf %178, %180 : vector<8x128xf32>
    %c0_46 = arith.constant 0 : index
    %c0_47 = arith.constant 0 : index
    %182 = vector.load %arg6[%c0_46, %c0_47] : memref<8x128xf32, #tpu.memory_space<vmem>>, vector<8x128xf32>
    tpu.vector_store %arg6[%c0_46, %c0_47], %181 {strides = array<i32>} : memref<8x128xf32, #tpu.memory_space<vmem>>, vector<8x128xf32>,
    return
  }
}

</mosaic_0001>

<bundles_post_ra>
// kernel: lstm_model_forward.1
= control target key start
LH: loop header
LB: loop body
LE: loop exit
PB: predicated region body
PF: predicated region fallthrough
CT: control target
= control target key end

     0   :  { %v1288_v0 = vmov 0.0   ;;  %vm1289_vm0 = vmmov 0   ;;  %vm40_vm1 = vcmask 130048   ;;  %s1290_s13 = smov 32   ;;  %vm174_vm2 = vcmask 261120   ;;  %s1555_s1 = inlined_call_operand.vmem [shape: f32[16,128], index: 1, kind: input, shape index: {}]   ;;  %s1556_s2 = inlined_call_operand.vmem [shape: f32[32,128], index: 2, kind: input, shape index: {}]   ;;  %s1557_s0 = inlined_call_operand.vmem [shape: f32[64,16], index: 0, kind: input, shape index: {}]   ;;  %s1558_s3 = inlined_call_operand.vmem [shape: f32[1,128], index: 3, kind: input, shape index: {}]   ;;  %s1559_s4 = inlined_call_operand.vmem [shape: f32[32,128], index: 4, kind: input, shape index: {}]   ;;  %s1560_s5 = inlined_call_operand.vmem [shape: f32[1,128], index: 5, kind: input, shape index: {}]   ;;  %s1561_s6 = inlined_call_operand.vmem [shape: f32[8,128], index: 6, kind: output, shape index: {}]  }
   0x1   :  { %1137 = vmatprep.subr.mxu1 %v1288_v0  ;;  %v32_v1 = vld [vmem:[%s1555_s1 + $0x8] sm:$0xff]  ;;  %v1334_v2 = vld [vmem:[%s1556_s2 + $0x18] sm:$0xff]  ;;  %v31_v3 = vld [vmem:[%s1555_s1] sm:$0xff]  ;;  %1145 = vmatprep.mubr.msk.f32.mxu1 %vm1289_vm0, %v1288_v0 }
   0x2   :  { %1121 = vmatprep.subr.mxu0 %v32_v1  ;;  %1138 = vmatpush3.msra.mxu1 %v1334_v2  ;;  %v1345_v4 = vld [vmem:[%s1556_s2 + $0x10] sm:$0xff]  ;;  %v23_v5 = vld [vmem:[%s1557_s0] sm:$0xff]  ;;  %v24_v6 = vld [vmem:[%s1557_s0 + $0x8] sm:$0xff] }
   0x3   :  { %1122 = vmatpush3.msra.mxu0 %v32_v1  ;;  %1139 = vmatprep.subr.mxu1 %v1288_v0  ;;  %v1358_v7 = vld [vmem:[%s1556_s2 + $0x8] sm:$0xff]  ;;  %v1366_v8 = vld [vmem:[%s1556_s2] sm:$0xff]  ;;  %v25_v44 = vld [vmem:[%s1557_s0 + $0x10] sm:$0xff] }
   0x4   :  { %1123 = vmatprep.subr.mxu0 %v31_v3  ;;  %1140 = vmatpush3.msra.mxu1 %v1345_v4  ;;  %v1395_v10 = vld [vmem:[%s1558_s3] ss:$0 sm:$0xff]  ;;  %s1291_s3 = smov 64   ;;  %v26_v45 = vld [vmem:[%s1557_s0 + $0x18] sm:$0xff]  ;;  %v28_v47 = vld [vmem:[%s1557_s0 + $0x28] sm:$0xff] }
   0x5   :  { %1124 = vmatpush3.msra.mxu0 %v31_v3  ;;  %1125 = vmatprep.mubr.msk.f32.mxu0 %vm40_vm1, %v23_v5  ;;  %v27_v46 = vld [vmem:[%s1557_s0 + $0x20] sm:$0xff]  ;;  %v29_v48 = vld [vmem:[%s1557_s0 + $0x30] sm:$0xff]  ;;  %v30_v49 = vld [vmem:[%s1557_s0 + $0x38] sm:$0xff] }
   0x6   :  { %1141 = vmatprep.subr.mxu1 %v1288_v0  ;;  %1126 = vmatmul.mubr.msk.f32.vlgmr.msra.gmra.mxu0 %vm40_vm1, %v24_v6 }
   0x7   :  { %1142 = vmatpush3.msra.mxu1 %v1358_v7  ;;  %1159 = vmatprep.subr.mxu0 %v1288_v0 }
   0x8   :  { %1143 = vmatprep.subr.mxu1 %v1288_v0  ;;  %1160 = vmatpush3.msra.mxu0 %v1334_v2 }
   0x9   :  { %1144 = vmatpush3.msra.mxu1 %v1366_v8  ;;  %1161 = vmatprep.subr.mxu0 %v1288_v0 }
   0xa   :  { %1146 = vmatmul.mubr.f32.vlgmr.msra.gmra.mxu1 %v1288_v0  ;;  %1148 = vmatprep.subr.mxu1 %v1288_v0 }
   0xb   :  { %1149 = vmatpush3.msra.mxu1 %v1334_v2  ;;  %1156 = vmatprep.mubr.msk.f32.mxu1 %vm1289_vm0, %v1288_v0 }
   0xc   :  { %1150 = vmatprep.subr.mxu1 %v1288_v0  ;;  %1162 = vmatpush3.msra.mxu0 %v1345_v4 }
   0xd   :  { %1151 = vmatpush3.msra.mxu1 %v1345_v4  ;;  %1163 = vmatprep.subr.mxu0 %v1288_v0 }
   0xe   :  { %1152 = vmatprep.subr.mxu1 %v1288_v0  ;;  %1164 = vmatpush3.msra.mxu0 %v1358_v7 }
   0xf   :  { %1153 = vmatpush3.msra.mxu1 %v1358_v7  ;;  %1165 = vmatprep.subr.mxu0 %v1288_v0 }
  0x10   :  { %1154 = vmatprep.subr.mxu1 %v1288_v0  ;;  %1166 = vmatpush3.msra.mxu0 %v1366_v8 }
  0x11   :  { %1155 = vmatpush3.msra.mxu1 %v1366_v8  ;;  %1181 = vmatprep.subr.mxu0 %v1288_v0 }
  0x12   :  { %1170 = vmatprep.subr.mxu1 %v1288_v0  ;;  %1128 = vmatprep.mubr.msk.f32.mxu0 %vm40_vm1, %v25_v44 }
  0x13   :  { %1129 = vmatmul.mubr.msk.f32.gmra.mxu0 %vm40_vm1, %v26_v45 }
  0x14   :  { %1131 = vmatprep.mubr.msk.f32.mxu0 %vm40_vm1, %v27_v46 }
  0x17   :  { %1132 = vmatmul.mubr.msk.f32.gmra.mxu0 %vm40_vm1, %v28_v47 }
  0x18   :  { %1134 = vmatprep.mubr.msk.f32.mxu0 %vm40_vm1, %v29_v48 }
  0x1b   :  { %1135 = vmatmul.mubr.msk.f32.gmra.mxu0 %vm40_vm1, %v30_v49 }
  0x1c   :  { %1167 = vmatprep.mubr.msk.f32.mxu0 %vm1289_vm0, %v1288_v0 }
  0xc6   :  { %v1127_v9 = vpop.f32.mrf.mxu0 }
  0xc7   :  { %v137_v30 = vadd.f32 %v1127_v9, %v1395_v10 }
  0xc8   :  { %v131_v11 = vpop.f32.mrf.mxu0 }
  0xc9   :  { %v132_v12 = vadd.f32 %v1395_v10, %v131_v11 }
  0xca   :  { %v244_v13 = vpop.f32.mrf.mxu1 }
  0xcb   :  { %v248_v14 = vadd.f32 %v244_v13, %v132_v12 }
  0xcc   :  { %v1147_v15 = vpop.f32.mrf.mxu1 }
  0xcd   :  { %1240 = vtanh.f32 %v248_v14  ;;  %v249_v17 = vmul.f32 0.5, %v248_v14 }
  0xcf   :  { %1242 = vtanh.f32 %v249_v17 }
  0xd3   :  { %v1130_v54 = vpop.f32.mrf.mxu0 }
  0xd5   :  { %v141_v55 = vpop.f32.mrf.mxu0 }
  0xd6   :  { %v142_v60 = vadd.f32 %v1395_v10, %v141_v55 }
  0xd7   :  { %v1455_v56 = vpop.f32.mrf.mxu0 }
  0xd9   :  { %v1457_v57 = vpop.f32.mrf.mxu0 }
  0xda   :  { %v1241_v16 = vpop.eup %1240 }
  0xdb   :  { %256 = vrot.lane.b32.xlu0 %v1241_v16, %s1290_s13  ;;  %v1459_v58 = vpop.f32.mrf.mxu0 }
  0xdc   :  { %v1243_v18 = vpop.eup %1242 }
  0xdd   :  { %v251_v19 = vmul.f32 0.5, %v1243_v18  ;;  %v1461_v59 = vpop.f32.mrf.mxu0 }
  0xdf   :  { %v252_v20 = vadd.f32 0.5, %v251_v19 }
  0xe1   :  { %v254_v23 = vmul.f32 0.0, %v252_v20 }
 0x14d   :  { %v257_v21 = vpop.permute.xlu0 %256 }
 0x14e   :  { %v259_v22 = vmul.f32 %v257_v21, %v252_v20 }
 0x150   :  { %261 = vrot.lane.b32.xlu0 %v259_v22, %s1290_s13 }
 0x1c2   :  { %v262_v24 = vpop.permute.xlu0 %261 }
 0x1c3   :  { %v264_v25 = vadd.f32 %v262_v24, %v254_v23 }
 0x1c5   :  { %1244 = vtanh.f32 %v264_v25 }
 0x1d2   :  { %v1245_v26 = vpop.eup %1244 }
 0x1d3   :  { %267 = vrot.lane.b32.xlu1 %v1245_v26, %s1290_s13 }
 0x245   :  { %v268_v27 = vpop.permute.xlu1 %267 }
 0x246   :  { %v270_v28 = vmul.f32 %v268_v27, %v252_v20  ;;  %v147_v20 = vadd.f32 %v1130_v54, %v1395_v10 }
 0x248   :  { %272 = vrot.lane.b32.xlu1 %v270_v28, %s1291_s3 }
 0x2ba   :  { %v273_v29 = vpop.permute.xlu1 %272 }
 0x2bb   :  { %1157 = vmatmul.mubr.msk.f32.vlgmr.msra.gmra.mxu1 %vm174_vm2, %v273_v29 }
 0x2bc   :  { %1171 = vmatpush3.msra.mxu1 %v1334_v2  ;;  %1178 = vmatprep.mubr.msk.f32.mxu1 %vm1289_vm0, %v1288_v0 }
 0x2bd   :  { %1172 = vmatprep.subr.mxu1 %v1288_v0 }
 0x2be   :  { %1173 = vmatpush3.msra.mxu1 %v1345_v4 }
 0x2bf   :  { %1174 = vmatprep.subr.mxu1 %v1288_v0 }
 0x2c0   :  { %1175 = vmatpush3.msra.mxu1 %v1358_v7 }
 0x2c1   :  { %1176 = vmatprep.subr.mxu1 %v1288_v0 }
 0x2c2   :  { %1177 = vmatpush3.msra.mxu1 %v1366_v8 }
 0x2c3   :  { %1192 = vmatprep.subr.mxu1 %v1288_v0 }
 0x37b   :  { %v342_v31 = vpop.f32.mrf.mxu1 }
 0x37c   :  { %v346_v32 = vadd.f32 %v342_v31, %v137_v30 }
 0x37d   :  { %v1158_v33 = vpop.f32.mrf.mxu1 }
 0x37e   :  { %1246 = vtanh.f32 %v346_v32  ;;  %v347_v35 = vmul.f32 0.5, %v346_v32 }
 0x380   :  { %1248 = vtanh.f32 %v347_v35 }
 0x38b   :  { %v1247_v34 = vpop.eup %1246 }
 0x38c   :  { %354 = vrot.lane.b32.xlu0 %v1247_v34, %s1290_s13 }
 0x38d   :  { %v1249_v36 = vpop.eup %1248 }
 0x38e   :  { %v349_v37 = vmul.f32 0.5, %v1249_v36 }
 0x390   :  { %v350_v38 = vadd.f32 0.5, %v349_v37 }
 0x392   :  { %v352_v41 = vmul.f32 %v350_v38, %v264_v25 }
 0x3fe   :  { %v355_v39 = vpop.permute.xlu0 %354 }
 0x3ff   :  { %v357_v40 = vmul.f32 %v355_v39, %v350_v38 }
 0x401   :  { %359 = vrot.lane.b32.xlu1 %v357_v40, %s1290_s13 }
 0x473   :  { %v360_v42 = vpop.permute.xlu1 %359 }
 0x474   :  { %v362_v43 = vadd.f32 %v360_v42, %v352_v41 }
 0x476   :  { %1250 = vtanh.f32 %v362_v43 }
 0x483   :  { %v1251_v50 = vpop.eup %1250 }
 0x484   :  { %365 = vrot.lane.b32.xlu0 %v1251_v50, %s1290_s13 }
 0x4f6   :  { %v366_v51 = vpop.permute.xlu0 %365 }
 0x4f7   :  { %v368_v52 = vmul.f32 %v366_v51, %v350_v38  ;;  %v152_v38 = vadd.f32 %v1395_v10, %v1457_v57  ;;  %v157_v57 = vadd.f32 %v1455_v56, %v1395_v10 }
 0x4f9   :  { %370 = vrot.lane.b32.xlu1 %v368_v52, %s1291_s3 }
 0x56b   :  { %v371_v53 = vpop.permute.xlu1 %370 }
 0x56c   :  { %1168 = vmatmul.mubr.msk.f32.vlgmr.msra.gmra.mxu0 %vm174_vm2, %v371_v53 }
 0x56d   :  { %1182 = vmatpush3.msra.mxu0 %v1334_v2  ;;  %1189 = vmatprep.mubr.msk.f32.mxu0 %vm1289_vm0, %v1288_v0 }
 0x56e   :  { %1183 = vmatprep.subr.mxu0 %v1288_v0 }
 0x56f   :  { %1184 = vmatpush3.msra.mxu0 %v1345_v4 }
 0x570   :  { %1185 = vmatprep.subr.mxu0 %v1288_v0 }
 0x571   :  { %1186 = vmatpush3.msra.mxu0 %v1358_v7 }
 0x572   :  { %1187 = vmatprep.subr.mxu0 %v1288_v0 }
 0x573   :  { %1188 = vmatpush3.msra.mxu0 %v1366_v8 }
 0x574   :  { %1203 = vmatprep.subr.mxu0 %v1288_v0 }
 0x62c   :  { %v440_v61 = vpop.f32.mrf.mxu0 }
 0x62d   :  { %v444_v62 = vadd.f32 %v440_v61, %v142_v60 }
 0x62e   :  { %v1169_v63 = vpop.f32.mrf.mxu0 }
 0x62f   :  { %1252 = vtanh.f32 %v444_v62  ;;  %v445_v3 = vmul.f32 0.5, %v444_v62 }
 0x631   :  { %1254 = vtanh.f32 %v445_v3 }
 0x63c   :  { %v1253_v1 = vpop.eup %1252 }
 0x63d   :  { %452 = vrot.lane.b32.xlu0 %v1253_v1, %s1290_s13 }
 0x63e   :  { %v1255_v5 = vpop.eup %1254 }
 0x63f   :  { %v447_v6 = vmul.f32 0.5, %v1255_v5 }
 0x641   :  { %v448_v9 = vadd.f32 0.5, %v447_v6 }
 0x643   :  { %v450_v13 = vmul.f32 %v448_v9, %v362_v43 }
 0x6af   :  { %v453_v11 = vpop.permute.xlu0 %452 }
 0x6b0   :  { %v455_v12 = vmul.f32 %v453_v11, %v448_v9 }
 0x6b2   :  { %457 = vrot.lane.b32.xlu1 %v455_v12, %s1290_s13 }
 0x724   :  { %v458_v14 = vpop.permute.xlu1 %457 }
 0x725   :  { %v460_v15 = vadd.f32 %v458_v14, %v450_v13  ;;  %v162_v14 = vadd.f32 %v1395_v10, %v1461_v59 }
 0x727   :  { %1256 = vtanh.f32 %v460_v15 }
 0x734   :  { %v1257_v16 = vpop.eup %1256 }
 0x735   :  { %463 = vrot.lane.b32.xlu0 %v1257_v16, %s1290_s13 }
 0x7a7   :  { %v464_v17 = vpop.permute.xlu0 %463 }
 0x7a8   :  { %v466_v18 = vmul.f32 %v464_v17, %v448_v9 }
 0x7aa   :  { %468 = vrot.lane.b32.xlu1 %v466_v18, %s1291_s3 }
 0x81c   :  { %v469_v19 = vpop.permute.xlu1 %468 }
 0x81d   :  { %1179 = vmatmul.mubr.msk.f32.vlgmr.msra.gmra.mxu1 %vm174_vm2, %v469_v19 }
 0x81e   :  { %1193 = vmatpush3.msra.mxu1 %v1334_v2  ;;  %1200 = vmatprep.mubr.msk.f32.mxu1 %vm1289_vm0, %v1288_v0 }
 0x81f   :  { %1194 = vmatprep.subr.mxu1 %v1288_v0 }
 0x820   :  { %1195 = vmatpush3.msra.mxu1 %v1345_v4 }
 0x821   :  { %1196 = vmatprep.subr.mxu1 %v1288_v0 }
 0x822   :  { %1197 = vmatpush3.msra.mxu1 %v1358_v7 }
 0x823   :  { %1198 = vmatprep.subr.mxu1 %v1288_v0 }
 0x824   :  { %1199 = vmatpush3.msra.mxu1 %v1366_v8 }
 0x825   :  { %1214 = vmatprep.subr.mxu1 %v1288_v0 }
 0x8dd   :  { %v538_v21 = vpop.f32.mrf.mxu1 }
 0x8de   :  { %v542_v22 = vadd.f32 %v538_v21, %v147_v20 }
 0x8df   :  { %v1180_v23 = vpop.f32.mrf.mxu1 }
 0x8e0   :  { %1258 = vtanh.f32 %v542_v22  ;;  %v543_v25 = vmul.f32 0.5, %v542_v22 }
 0x8e2   :  { %1260 = vtanh.f32 %v543_v25 }
 0x8ed   :  { %v1259_v24 = vpop.eup %1258 }
 0x8ee   :  { %550 = vrot.lane.b32.xlu0 %v1259_v24, %s1290_s13 }
 0x8ef   :  { %v1261_v26 = vpop.eup %1260 }
 0x8f0   :  { %v545_v27 = vmul.f32 0.5, %v1261_v26 }
 0x8f2   :  { %v546_v28 = vadd.f32 0.5, %v545_v27 }
 0x8f4   :  { %v548_v31 = vmul.f32 %v546_v28, %v460_v15 }
 0x960   :  { %v551_v29 = vpop.permute.xlu0 %550 }
 0x961   :  { %v553_v30 = vmul.f32 %v551_v29, %v546_v28 }
 0x963   :  { %555 = vrot.lane.b32.xlu1 %v553_v30, %s1290_s13 }
 0x9d5   :  { %v556_v32 = vpop.permute.xlu1 %555 }
 0x9d6   :  { %v558_v33 = vadd.f32 %v556_v32, %v548_v31  ;;  %v167_v31 = vadd.f32 %v1459_v58, %v1395_v10  ;;  %v960_v10 = vld [vmem:[%s1559_s4 + $0x18] sm:$0xff]  ;;  %v959_v58 = vld [vmem:[%s1559_s4 + $0x10] sm:$0xff] }
 0x9d8   :  { %1262 = vtanh.f32 %v558_v33 }
 0x9e5   :  { %v1263_v34 = vpop.eup %1262 }
 0x9e6   :  { %561 = vrot.lane.b32.xlu0 %v1263_v34, %s1290_s13 }
 0xa58   :  { %v562_v35 = vpop.permute.xlu0 %561 }
 0xa59   :  { %v564_v36 = vmul.f32 %v562_v35, %v546_v28 }
 0xa5b   :  { %566 = vrot.lane.b32.xlu1 %v564_v36, %s1291_s3 }
 0xacd   :  { %v567_v37 = vpop.permute.xlu1 %566 }
 0xace   :  { %1190 = vmatmul.mubr.msk.f32.vlgmr.msra.gmra.mxu0 %vm174_vm2, %v567_v37 }
 0xacf   :  { %1204 = vmatpush3.msra.mxu0 %v1334_v2  ;;  %1211 = vmatprep.mubr.msk.f32.mxu0 %vm1289_vm0, %v1288_v0 }
 0xad0   :  { %1205 = vmatprep.subr.mxu0 %v1288_v0 }
 0xad1   :  { %1206 = vmatpush3.msra.mxu0 %v1345_v4 }
 0xad2   :  { %1207 = vmatprep.subr.mxu0 %v1288_v0 }
 0xad3   :  { %1208 = vmatpush3.msra.mxu0 %v1358_v7 }
 0xad4   :  { %1209 = vmatprep.subr.mxu0 %v1288_v0 }
 0xad5   :  { %1210 = vmatpush3.msra.mxu0 %v1366_v8 }
 0xad6   :  { %1225 = vmatprep.subr.mxu0 %v1288_v0 }
 0xb8e   :  { %v636_v39 = vpop.f32.mrf.mxu0 }
 0xb8f   :  { %v640_v40 = vadd.f32 %v636_v39, %v152_v38 }
 0xb90   :  { %v1191_v41 = vpop.f32.mrf.mxu0 }
 0xb91   :  { %1264 = vtanh.f32 %v640_v40  ;;  %v641_v43 = vmul.f32 0.5, %v640_v40 }
 0xb93   :  { %1266 = vtanh.f32 %v641_v43 }
 0xb9e   :  { %v1265_v42 = vpop.eup %1264 }
 0xb9f   :  { %648 = vrot.lane.b32.xlu0 %v1265_v42, %s1290_s13 }
 0xba0   :  { %v1267_v44 = vpop.eup %1266 }
 0xba1   :  { %v643_v45 = vmul.f32 0.5, %v1267_v44 }
 0xba3   :  { %v644_v46 = vadd.f32 0.5, %v643_v45  ;;  %v958_v45 = vld [vmem:[%s1559_s4 + $0x8] sm:$0xff] }
 0xba5   :  { %v646_v49 = vmul.f32 %v644_v46, %v558_v33 }
 0xc11   :  { %v649_v47 = vpop.permute.xlu0 %648 }
 0xc12   :  { %v651_v48 = vmul.f32 %v649_v47, %v644_v46 }
 0xc14   :  { %653 = vrot.lane.b32.xlu1 %v651_v48, %s1290_s13 }
 0xc86   :  { %v654_v50 = vpop.permute.xlu1 %653 }
 0xc87   :  { %v656_v51 = vadd.f32 %v654_v50, %v646_v49 }
 0xc89   :  { %1268 = vtanh.f32 %v656_v51 }
 0xc96   :  { %v1269_v52 = vpop.eup %1268 }
 0xc97   :  { %659 = vrot.lane.b32.xlu0 %v1269_v52, %s1290_s13 }
 0xd09   :  { %v660_v53 = vpop.permute.xlu0 %659 }
 0xd0a   :  { %v662_v54 = vmul.f32 %v660_v53, %v644_v46  ;;  %v957_v46 = vld [vmem:[%s1559_s4] sm:$0xff] }
 0xd0c   :  { %664 = vrot.lane.b32.xlu1 %v662_v54, %s1291_s3 }
 0xd7e   :  { %v665_v55 = vpop.permute.xlu1 %664 }
 0xd7f   :  { %1201 = vmatmul.mubr.msk.f32.vlgmr.msra.gmra.mxu1 %vm174_vm2, %v665_v55 }
 0xd80   :  { %1215 = vmatpush3.msra.mxu1 %v1334_v2  ;;  %1222 = vmatprep.mubr.msk.f32.mxu1 %vm1289_vm0, %v1288_v0 }
 0xd81   :  { %1216 = vmatprep.subr.mxu1 %v1288_v0 }
 0xd82   :  { %1217 = vmatpush3.msra.mxu1 %v1345_v4 }
 0xd83   :  { %1218 = vmatprep.subr.mxu1 %v1288_v0 }
 0xd84   :  { %1219 = vmatpush3.msra.mxu1 %v1358_v7 }
 0xd85   :  { %1220 = vmatprep.subr.mxu1 %v1288_v0 }
 0xd86   :  { %1221 = vmatpush3.msra.mxu1 %v1366_v8 }
 0xe3f   :  { %v734_v60 = vpop.f32.mrf.mxu1 }
 0xe40   :  { %v738_v2 = vadd.f32 %v734_v60, %v157_v57 }
 0xe41   :  { %v1202_v61 = vpop.f32.mrf.mxu1 }
 0xe42   :  { %1270 = vtanh.f32 %v738_v2  ;;  %v739_v63 = vmul.f32 0.5, %v738_v2 }
 0xe44   :  { %1272 = vtanh.f32 %v739_v63 }
 0xe4f   :  { %v1271_v62 = vpop.eup %1270 }
 0xe50   :  { %746 = vrot.lane.b32.xlu0 %v1271_v62, %s1290_s13 }
 0xe51   :  { %v1273_v4 = vpop.eup %1272 }
 0xe52   :  { %v741_v1 = vmul.f32 0.5, %v1273_v4 }
 0xe54   :  { %v742_v3 = vadd.f32 0.5, %v741_v1 }
 0xe56   :  { %v744_v8 = vmul.f32 %v742_v3, %v656_v51  ;;  %v1064_v51 = vld [vmem:[%s1560_s5] ss:$0 sm:$0xff] }
 0xec2   :  { %v747_v7 = vpop.permute.xlu0 %746 }
 0xec3   :  { %v749_v5 = vmul.f32 %v747_v7, %v742_v3 }
 0xec5   :  { %751 = vrot.lane.b32.xlu1 %v749_v5, %s1290_s13 }
 0xf37   :  { %v752_v6 = vpop.permute.xlu1 %751 }
 0xf38   :  { %v754_v9 = vadd.f32 %v752_v6, %v744_v8 }
 0xf3a   :  { %1274 = vtanh.f32 %v754_v9 }
 0xf47   :  { %v1275_v56 = vpop.eup %1274 }
 0xf48   :  { %757 = vrot.lane.b32.xlu0 %v1275_v56, %s1290_s13 }
 0xfba   :  { %v758_v11 = vpop.permute.xlu0 %757 }
 0xfbb   :  { %v760_v12 = vmul.f32 %v758_v11, %v742_v3 }
 0xfbd   :  { %762 = vrot.lane.b32.xlu1 %v760_v12, %s1291_s3 }
0x102f   :  { %v763_v13 = vpop.permute.xlu1 %762 }
0x1030   :  { %1212 = vmatmul.mubr.msk.f32.vlgmr.msra.gmra.mxu0 %vm174_vm2, %v763_v13 }
0x1031   :  { %1233 = vmatprep.mubr.msk.f32.mxu0 %vm1289_vm0, %v1288_v0  ;;  %1226 = vmatpush3.msra.mxu0 %v960_v10 }
0x1032   :  { %1227 = vmatprep.subr.mxu0 %v1288_v0 }
0x1033   :  { %1228 = vmatpush3.msra.mxu0 %v959_v58 }
0x1034   :  { %1229 = vmatprep.subr.mxu0 %v1288_v0 }
0x1035   :  { %1230 = vmatpush3.msra.mxu0 %v958_v45 }
0x1036   :  { %1231 = vmatprep.subr.mxu0 %v1288_v0 }
0x1037   :  { %1232 = vmatpush3.msra.mxu0 %v957_v46 }
0x10f0   :  { %v832_v15 = vpop.f32.mrf.mxu0 }
0x10f1   :  { %v836_v16 = vadd.f32 %v832_v15, %v162_v14 }
0x10f2   :  { %v1213_v17 = vpop.f32.mrf.mxu0 }
0x10f3   :  { %1276 = vtanh.f32 %v836_v16  ;;  %v837_v19 = vmul.f32 0.5, %v836_v16 }
0x10f5   :  { %1278 = vtanh.f32 %v837_v19 }
0x1100   :  { %v1277_v18 = vpop.eup %1276 }
0x1101   :  { %844 = vrot.lane.b32.xlu0 %v1277_v18, %s1290_s13 }
0x1102   :  { %v1279_v20 = vpop.eup %1278 }
0x1103   :  { %v839_v21 = vmul.f32 0.5, %v1279_v20 }
0x1105   :  { %v840_v22 = vadd.f32 0.5, %v839_v21 }
0x1107   :  { %v842_v25 = vmul.f32 %v840_v22, %v754_v9 }
0x1173   :  { %v845_v23 = vpop.permute.xlu0 %844 }
0x1174   :  { %v847_v24 = vmul.f32 %v845_v23, %v840_v22 }
0x1176   :  { %849 = vrot.lane.b32.xlu1 %v847_v24, %s1290_s13 }
0x11e8   :  { %v850_v26 = vpop.permute.xlu1 %849 }
0x11e9   :  { %v852_v27 = vadd.f32 %v850_v26, %v842_v25 }
0x11eb   :  { %1280 = vtanh.f32 %v852_v27 }
0x11f8   :  { %v1281_v59 = vpop.eup %1280 }
0x11f9   :  { %855 = vrot.lane.b32.xlu0 %v1281_v59, %s1290_s13 }
0x126b   :  { %v856_v28 = vpop.permute.xlu0 %855 }
0x126c   :  { %v858_v29 = vmul.f32 %v856_v28, %v840_v22 }
0x126e   :  { %860 = vrot.lane.b32.xlu1 %v858_v29, %s1291_s3 }
0x12e0   :  { %v861_v30 = vpop.permute.xlu1 %860 }
0x12e1   :  { %1223 = vmatmul.mubr.msk.f32.vlgmr.msra.gmra.mxu1 %vm174_vm2, %v861_v30 }
0x13a1   :  { %v930_v32 = vpop.f32.mrf.mxu1 }
0x13a2   :  { %v934_v33 = vadd.f32 %v930_v32, %v167_v31 }
0x13a3   :  { %v1224_v34 = vpop.f32.mrf.mxu1 }
0x13a4   :  { %1282 = vtanh.f32 %v934_v33  ;;  %v935_v36 = vmul.f32 0.5, %v934_v33 }
0x13a6   :  { %1284 = vtanh.f32 %v935_v36 }
0x13b1   :  { %v1283_v35 = vpop.eup %1282 }
0x13b2   :  { %942 = vrot.lane.b32.xlu0 %v1283_v35, %s1290_s13 }
0x13b3   :  { %v1285_v37 = vpop.eup %1284 }
0x13b4   :  { %v937_v38 = vmul.f32 0.5, %v1285_v37 }
0x13b6   :  { %v938_v39 = vadd.f32 0.5, %v937_v38 }
0x13b8   :  { %v940_v42 = vmul.f32 %v938_v39, %v852_v27 }
0x1424   :  { %v943_v40 = vpop.permute.xlu0 %942 }
0x1425   :  { %v945_v41 = vmul.f32 %v943_v40, %v938_v39 }
0x1427   :  { %947 = vrot.lane.b32.xlu1 %v945_v41, %s1290_s13 }
0x1499   :  { %v948_v43 = vpop.permute.xlu1 %947 }
0x149a   :  { %v950_v44 = vadd.f32 %v948_v43, %v940_v42 }
0x149c   :  { %1286 = vtanh.f32 %v950_v44 }
0x14a9   :  { %v1287_v47 = vpop.eup %1286 }
0x14aa   :  { %953 = vrot.lane.b32.xlu0 %v1287_v47, %s1290_s13 }
0x151c   :  { %v954_v48 = vpop.permute.xlu0 %953 }
0x151d   :  { %v956_v49 = vmul.f32 %v954_v48, %v938_v39 }
0x151f   :  { %969 = vrot.lane.b32.xlu1 %v956_v49, %s1291_s3 }
0x1591   :  { %v970_v50 = vpop.permute.xlu1 %969 }
0x1592   :  { %1234 = vmatmul.mubr.msk.f32.vlgmr.msra.gmra.mxu0 %vm174_vm2, %v970_v50 }
0x1652   :  { %v1039_v52 = vpop.f32.mrf.mxu0 }
0x1653   :  { %v1040_v53 = vadd.f32 %v1064_v51, %v1039_v52 }
0x1654   :  { %v1235_v54 = vpop.f32.mrf.mxu0 }
0x1655   :  { %1043 = vst [vmem:[%s1561_s6] sm:$0xff] %v1040_v53 }

</bundles_post_ra>
